<compile_context>
chip_gen: v7x
topology: tpu7x:2x2x1
jax: 0.10.0
libtpu: 0.0.40
codegen_flags: <defaults>
</compile_context>

<pallas_src>
import functools

import jax
import jax.numpy as jnp
from jax.experimental import pallas as pl
from jax.experimental.pallas import tpu as pltpu


def _round_up(v, m):
    return (v + m - 1) // m * m


def _tpu_vmem_capacity_bytes():
    """Per-core VMEM capacity in bytes; conservative fallback if the query fails."""
    try:
        cap = getattr(pltpu.get_tpu_info(), "vmem_capacity_bytes", None)
        if cap:
            return int(cap)
    except Exception:
        pass
    return 64 * (1 << 20)   # v7x per-TensorCore VMEM (smallest of v5e/v6e/v7x)


def _fused_head_kernel(*refs, n_layers, n_rows, eps, mxu_dtype, act_dtype, needs_mask):
    """Fused L-layer (Linear -> BN [-> ReLU]) head.

    Grid = (n_layers + 1, n_batch_tiles), both axes "arbitrary" (sequential).
      phase 0          : y0 = x @ W0            (store in VMEM scratch, accumulate stats)
      phase p in 1..L-1: h = relu(BN_affine(y_{p-1})); y_p = h @ W_p  (store + stats)
      phase L          : out = BN_nonaffine(y_{L-1})
    BN (+ affine) is applied as a cached per-feature scale/shift computed once per layer
    (at the first tile of the consuming phase).
    """
    L = n_layers
    i = 0
    x_ref = refs[i]; i += 1
    w_refs = refs[i:i + L]; i += L
    g_refs = refs[i:i + L - 1]; i += L - 1
    b_refs = refs[i:i + L - 1]; i += L - 1
    o_ref = refs[i]; i += 1
    y_scr = refs[i:i + L]; i += L          # per-layer activations   (n_pad, f)
    s_scr = refs[i:i + L]; i += L          # sum partials            (8, f)
    q_scr = refs[i:i + L]; i += L          # sum-of-squares partials (8, f)
    scale_scr = refs[i:i + L]; i += L      # cached BN*affine scale  (1, f)
    shift_scr = refs[i:i + L]; i += L      # cached BN*affine shift  (1, f)
    assert i == len(refs)

    phase = pl.program_id(0)
    t = pl.program_id(1)
    tile_n = x_ref.shape[0]
    row0 = pl.multiple_of(t * tile_n, tile_n)
    inv_n = 1.0 / float(n_rows)

    # Zero all stat accumulators once, at the very first grid step.
    @pl.when((phase == 0) & (t == 0))
    def _init():
        for l in range(L):
            s_scr[l][...] = jnp.zeros_like(s_scr[l])
            q_scr[l][...] = jnp.zeros_like(q_scr[l])

    def accumulate(l, y):
        # (tile_n, f) -> (tile_n//8, 8, f): the axis-0 reduce is pure VPU vreg adds.
        # The final sublane (XLU) reduce happens once per layer in finalize_stats().
        yr = y.reshape(tile_n // 8, 8, y.shape[-1])
        s_scr[l][...] += jnp.sum(yr, axis=0)
        q_scr[l][...] += jnp.sum(yr * yr, axis=0)

    def finalize_stats(l, gamma, beta):
        # Fold BN (+ optional affine) into a single per-feature scale/shift.
        s_tot = jnp.sum(s_scr[l][...], axis=0, keepdims=True)
        q_tot = jnp.sum(q_scr[l][...], axis=0, keepdims=True)
        mean = s_tot * inv_n
        var = jnp.maximum(q_tot * inv_n - mean * mean, 0.0)
        scale = jax.lax.rsqrt(var + eps)
        if gamma is not None:
            scale = scale * gamma
        shift = -mean * scale
        if beta is not None:
            shift = shift + beta
        scale_scr[l][...] = scale
        shift_scr[l][...] = shift

    if needs_mask and L > 1:
        rows = row0 + jax.lax.broadcasted_iota(jnp.int32, (tile_n, 1), 0)
        valid = (rows < n_rows).astype(jnp.float32)

    # Phase 0: first linear layer.  Padded x rows are exactly zero, so padded y rows
    # are zero and the stat accumulate needs no mask.
    @pl.when(phase == 0)
    def _phase0():
        y = jnp.dot(x_ref[...].astype(mxu_dtype), w_refs[0][...].astype(mxu_dtype),
                    preferred_element_type=jnp.float32)
        accumulate(0, y)
        y_scr[0][pl.ds(row0, tile_n), :] = y.astype(act_dtype)

    # Phases 1..L-1: BN(l-1)*affine + ReLU, then linear(l).
    for ph in range(1, L):
        @pl.when(phase == ph)
        def _phase(ph=ph):
            @pl.when(t == 0)
            def _prep():
                finalize_stats(ph - 1, g_refs[ph - 1][...], b_refs[ph - 1][...])

            y_prev = y_scr[ph - 1][pl.ds(row0, tile_n), :].astype(jnp.float32)
            h = y_prev * scale_scr[ph - 1][...] + shift_scr[ph - 1][...]
            h = jnp.maximum(h, 0.0)
            if needs_mask:
                h = h * valid          # zero padded rows once -> layer-ph stats unmasked
            y = jnp.dot(h.astype(mxu_dtype), w_refs[ph][...].astype(mxu_dtype),
                        preferred_element_type=jnp.float32)
            accumulate(ph, y)
            y_scr[ph][pl.ds(row0, tile_n), :] = y.astype(act_dtype)

    # Phase L: final (non-affine) BN -> output.
    @pl.when(phase == L)
    def _final():
        @pl.when(t == 0)
        def _prep():
            finalize_stats(L - 1, None, None)

        y_last = y_scr[L - 1][pl.ds(row0, tile_n), :].astype(jnp.float32)
        o_ref[...] = (y_last * scale_scr[L - 1][...]
                      + shift_scr[L - 1][...]).astype(o_ref.dtype)


def _projection_head_forward(x, weights_p, gammas_p, betas_p, *, out_dim,
                             mxu_dtype=jnp.bfloat16, eps=1e-12, tile_rows=1024,
                             act_scratch_dtype=None):
    """Run the fused projection head.  Inputs are lane-padded parameters."""
    n, in_dim = x.shape
    L = len(weights_p)
    f_pads = [w.shape[1] for w in weights_p]   # padded out-features per layer
    out_pad = f_pads[-1]

    tile_n = min(tile_rows, _round_up(n, 8))   # multiple of 8 (vreg sublanes)
    n_pad = _round_up(n, tile_n)
    n_tiles = n_pad // tile_n
    needs_mask = (n_pad != n)
    if needs_mask:
        x = jnp.pad(x, ((0, n_pad - n), (0, 0)))

    vmem_cap = _tpu_vmem_capacity_bytes()

    # Auto: bf16 activation scratch only when the f32 version would crowd VMEM
    # (matters on v7x's 64 MiB/TC); otherwise keep f32 for exactness.
    act_f32_bytes = n_pad * sum(f_pads) * 4
    if act_scratch_dtype is None:
        act_scratch_dtype = jnp.bfloat16 if act_f32_bytes > vmem_cap // 4 else jnp.float32
    act_itemsize = jnp.dtype(act_scratch_dtype).itemsize

    kernel = functools.partial(
        _fused_head_kernel, n_layers=L, n_rows=n, eps=eps,
        mxu_dtype=mxu_dtype, act_dtype=act_scratch_dtype, needs_mask=needs_mask)

    # x is only consumed in phase 0: freeze its block index at the last visited block
    # for every later phase, so it is DMA'd from HBM exactly once.
    x_spec = pl.BlockSpec(
        (tile_n, in_dim),
        lambda p, t, _last=n_tiles - 1: (jnp.where(p == 0, t, _last), 0))

    # Weights / gamma / beta are grid-invariant: place the full arrays in VMEM once
    # (single buffer, single DMA) instead of pipelined, double-buffered blocks.
    in_specs = [x_spec] + [
        pl.BlockSpec(memory_space=pltpu.MemorySpace.VMEM)
        for _ in range(len(weights_p) + len(gammas_p) + len(betas_p))
    ]

    # The output block index only advances during the final phase, so no partially
    # written block is ever flushed back to HBM.
    out_specs = pl.BlockSpec(
        (tile_n, out_pad),
        lambda p, t, _L=L: (jnp.where(p == _L, t, 0), 0))

    scratch_shapes = (
        [pltpu.VMEM((n_pad, f), act_scratch_dtype) for f in f_pads]   # activations
        + [pltpu.VMEM((8, f), jnp.float32) for f in f_pads]           # sum partials
        + [pltpu.VMEM((8, f), jnp.float32) for f in f_pads]           # sumsq partials
        + [pltpu.VMEM((1, f), jnp.float32) for f in f_pads]           # cached scale
        + [pltpu.VMEM((1, f), jnp.float32) for f in f_pads])          # cached shift

    # VMEM estimate: x/out double buffers + single-buffered constants + scratch.
    est = 2 * tile_n * in_dim * x.dtype.itemsize
    est += 2 * tile_n * out_pad * x.dtype.itemsize
    est += sum(w.size * w.dtype.itemsize for w in weights_p)
    est += sum(g.size * 4 for g in gammas_p) + sum(b.size * 4 for b in betas_p)
    est += n_pad * sum(f_pads) * act_itemsize
    est += sum((8 + 8 + 1 + 1) * f * 4 for f in f_pads)

    # Generation-aware scoped-VMEM limit: only raise it when the estimate approaches
    # the smallest default scoped limit (16 MiB on v5e), and never ask for more than
    # this chip's physical per-core VMEM minus headroom.
    vmem_limit = None
    default_scoped_limit = 16 * (1 << 20)
    if est > default_scoped_limit - (2 << 20):
        vmem_limit = min(int(est * 1.25) + (4 << 20), vmem_cap - (8 << 20))

    out = pl.pallas_call(
        kernel,
        out_shape=jax.ShapeDtypeStruct((n_pad, out_pad), x.dtype),
        grid_spec=pltpu.PrefetchScalarGridSpec(
            num_scalar_prefetch=0,
            grid=(L + 1, n_tiles),
            in_specs=in_specs,
            out_specs=out_specs,
            scratch_shapes=scratch_shapes),
        compiler_params=pltpu.CompilerParams(
            dimension_semantics=("arbitrary", "arbitrary"),
            vmem_limit_bytes=vmem_limit),
    )(x, *weights_p, *gammas_p, *betas_p)

    return out[:n, :out_dim]


class ProjectionHeadPallas:
    """JAX/Pallas equivalent of the PyTorch ProjectionHead forward (training-mode BN)."""

    def __init__(self, in_dim, mid_dim, out_dim, layer, key,
                 mxu_dtype=jnp.bfloat16, act_scratch_dtype=None):
        assert layer >= 1
        self.layer = layer
        self.out_dim = out_dim
        self.n_lg = 1              # args.sa_lg_bn = False
        self.mxu_dtype = mxu_dtype
        self.act_scratch_dtype = act_scratch_dtype

        self.weights = []          # unpadded f32 "parameters", [F_in, F_out]
        self.gammas, self.betas = [], []              # affine layers only (all but last)
        self.weights_padded = []   # lane-padded, stored in mxu_dtype (half the DMA bytes)
        self.gammas_padded, self.betas_padded = [], []

        f_pad_prev = None
        for i in range(layer):
            lin = mid_dim if i != 0 else in_dim
            lout = mid_dim if i != layer - 1 else out_dim
            key, sub = jax.random.split(key)
            bound = 1.0 / (lin ** 0.5)     # nn.Linear default init bound
            w = jax.random.uniform(sub, (lin, lout), jnp.float32,
                                   minval=-bound, maxval=bound)
            self.weights.append(w)

            in_pad = lin if i == 0 else f_pad_prev
            out_pad = _round_up(lout, 128)
            wp = jnp.zeros((in_pad, out_pad), jnp.float32).at[:lin, :lout].set(w)
            self.weights_padded.append(wp.astype(mxu_dtype))
            f_pad_prev = out_pad

            if i != layer - 1:   # affine BN on all but the last layer
                self.gammas.append(jnp.ones((1, lout), jnp.float32))
                self.betas.append(jnp.zeros((1, lout), jnp.float32))
                gp = jnp.zeros((1, out_pad), jnp.float32).at[:, :lout].set(1.0)
                self.gammas_padded.append(gp)
                self.betas_padded.append(jnp.zeros((1, out_pad), jnp.float32))

    def __call__(self, x, lg_id=0):
        # n_lg == 1 (args.sa_lg_bn=False) -> every lg_id maps to the same BN params.
        del lg_id
        return _projection_head_forward(
            x, self.weights_padded, self.gammas_padded, self.betas_padded,
            out_dim=self.out_dim, mxu_dtype=self.mxu_dtype,
            act_scratch_dtype=self.act_scratch_dtype)


def _reference_forward(model, x):
    """Pure-JAX reference mirroring the kernel (bf16 MXU inputs, f32 BN math)."""
    h = x
    L = model.layer
    for l in range(L):
        y = jnp.dot(h.astype(model.mxu_dtype),
                    model.weights[l].astype(model.mxu_dtype),
                    preferred_element_type=jnp.float32)
        mean = jnp.mean(y, axis=0, keepdims=True)
        var = jnp.mean((y - mean) ** 2, axis=0, keepdims=True)
        y = (y - mean) * jax.lax.rsqrt(var + 1e-12)
        if l != L - 1:
            y = y * model.gammas[l] + model.betas[l]
            y = jnp.maximum(y, 0.0)
        h = y
    return h


if __name__ == "__main__":
    key = jax.random.PRNGKey(0)
    k_in, k_in2, k_model = jax.random.split(key, 3)

    batch, in_dim, mid_dim, out_dim, n_layer = 8, 32, 64, 16, 2
    model = ProjectionHeadPallas(in_dim, mid_dim, out_dim, n_layer, k_model)

    # Case 1: batch divisible by the tile (no mask path).
    x = jax.random.normal(k_in, (batch, in_dim), jnp.float32)
    out = jax.block_until_ready(model(x, lg_id=0))
    ref = jax.block_until_ready(_reference_forward(model, x))
    assert out.shape == (batch, out_dim)
    assert bool(jnp.all(jnp.isfinite(out))), "non-finite output"
    assert jnp.allclose(out, ref, atol=2e-3, rtol=2e-3), "mismatch vs reference (case 1)"

    # Case 2: ragged batch exercising the padded-row mask path.
    x2 = jax.random.normal(k_in2, (12, in_dim), jnp.float32)
    out2 = jax.block_until_ready(model(x2, lg_id=3))
    ref2 = jax.block_until_ready(_reference_forward(model, x2))
    assert out2.shape == (12, out_dim)
    assert bool(jnp.all(jnp.isfinite(out2))), "non-finite output (case 2)"
    assert jnp.allclose(out2, ref2, atol=2e-3, rtol=2e-3), "mismatch vs reference (case 2)"

    print("KERNEL_OK")
</pallas_src>

<mosaic_0001>
module attributes {stable_mosaic.version = 11 : i64} {
  func.func @_fused_head_kernel(%arg0: i32, %arg1: i32, %arg2: memref<8x32xf32, #tpu.memory_space<vmem>>, %arg3: memref<32x128xbf16, #tpu.memory_space<vmem>>, %arg4: memref<128x128xbf16, #tpu.memory_space<vmem>>, %arg5: memref<1x128xf32, #tpu.memory_space<vmem>>, %arg6: memref<1x128xf32, #tpu.memory_space<vmem>>, %arg7: memref<8x128xf32, #tpu.memory_space<vmem>>, %arg8: memref<8x128xf32, #tpu.memory_space<vmem>>, %arg9: memref<8x128xf32, #tpu.memory_space<vmem>>, %arg10: memref<8x128xf32, #tpu.memory_space<vmem>>, %arg11: memref<8x128xf32, #tpu.memory_space<vmem>>, %arg12: memref<8x128xf32, #tpu.memory_space<vmem>>, %arg13: memref<8x128xf32, #tpu.memory_space<vmem>>, %arg14: memref<1x128xf32, #tpu.memory_space<vmem>>, %arg15: memref<1x128xf32, #tpu.memory_space<vmem>>, %arg16: memref<1x128xf32, #tpu.memory_space<vmem>>, %arg17: memref<1x128xf32, #tpu.memory_space<vmem>>) attributes {dimension_semantics = [#tpu.dimension_semantics<arbitrary>, #tpu.dimension_semantics<arbitrary>], iteration_bounds = array<i64: 3, 1>, scalar_prefetch = 0 : i64, scratch_operands = 10 : i64, tpu.core_type = #tpu.core_type<tc>, window_params = [{transform_indices = @transform_0, window_bounds = array<i64: 8, 32>}, {pipeline_mode = #tpu.pipeline_mode<synchronous>, transform_indices = @transform_1, window_bounds = array<i64: 32, 128>}, {pipeline_mode = #tpu.pipeline_mode<synchronous>, transform_indices = @transform_2, window_bounds = array<i64: 128, 128>}, {pipeline_mode = #tpu.pipeline_mode<synchronous>, transform_indices = @transform_3, window_bounds = array<i64: 1, 128>}, {pipeline_mode = #tpu.pipeline_mode<synchronous>, transform_indices = @transform_4, window_bounds = array<i64: 1, 128>}, {transform_indices = @transform_5, window_bounds = array<i64: 8, 128>}]} {
    %c8_i32 = arith.constant 8 : i32
    %0 = arith.muli %arg1, %c8_i32 : i32
    %1 = tpu.assume_multiple %0, 8 : i32
    %c0_i32 = arith.constant 0 : i32
    %2 = arith.cmpi eq, %arg0, %c0_i32 : i32
    %c0_i32_0 = arith.constant 0 : i32
    %3 = arith.cmpi eq, %arg1, %c0_i32_0 : i32
    %4 = arith.andi %2, %3 : i1
    %5 = arith.extui %4 : i1 to i32
    %c0_i32_1 = arith.constant 0 : i32
    %6 = arith.cmpi ne, %5, %c0_i32_1 : i32
    scf.if %6 {
      %cst = arith.constant 0.000000e+00 : f32
      %16 = vector.broadcast %cst : f32 to vector<8x128xf32>
      %c0 = arith.constant 0 : index
      %c0_6 = arith.constant 0 : index
      %17 = vector.load %arg10[%c0, %c0_6] : memref<8x128xf32, #tpu.memory_space<vmem>>, vector<8x128xf32>
      tpu.vector_store %arg10[%c0, %c0_6], %16 {strides = array<i32>} : memref<8x128xf32, #tpu.memory_space<vmem>>, vector<8x128xf32>,
      %cst_7 = arith.constant 0.000000e+00 : f32
      %18 = vector.broadcast %cst_7 : f32 to vector<8x128xf32>
      %c0_8 = arith.constant 0 : index
      %c0_9 = arith.constant 0 : index
      %19 = vector.load %arg12[%c0_8, %c0_9] : memref<8x128xf32, #tpu.memory_space<vmem>>, vector<8x128xf32>
      tpu.vector_store %arg12[%c0_8, %c0_9], %18 {strides = array<i32>} : memref<8x128xf32, #tpu.memory_space<vmem>>, vector<8x128xf32>,
      %cst_10 = arith.constant 0.000000e+00 : f32
      %20 = vector.broadcast %cst_10 : f32 to vector<8x128xf32>
      %c0_11 = arith.constant 0 : index
      %c0_12 = arith.constant 0 : index
      %21 = vector.load %arg11[%c0_11, %c0_12] : memref<8x128xf32, #tpu.memory_space<vmem>>, vector<8x128xf32>
      tpu.vector_store %arg11[%c0_11, %c0_12], %20 {strides = array<i32>} : memref<8x128xf32, #tpu.memory_space<vmem>>, vector<8x128xf32>,
      %cst_13 = arith.constant 0.000000e+00 : f32
      %22 = vector.broadcast %cst_13 : f32 to vector<8x128xf32>
      %c0_14 = arith.constant 0 : index
      %c0_15 = arith.constant 0 : index
      %23 = vector.load %arg13[%c0_14, %c0_15] : memref<8x128xf32, #tpu.memory_space<vmem>>, vector<8x128xf32>
      tpu.vector_store %arg13[%c0_14, %c0_15], %22 {strides = array<i32>} : memref<8x128xf32, #tpu.memory_space<vmem>>, vector<8x128xf32>,
    } else {
    }
    %c0_i32_2 = arith.constant 0 : i32
    %7 = arith.cmpi eq, %arg0, %c0_i32_2 : i32
    %8 = arith.extui %7 : i1 to i32
    %c0_i32_3 = arith.constant 0 : i32
    %9 = arith.cmpi ne, %8, %c0_i32_3 : i32
    scf.if %9 {
      %c0 = arith.constant 0 : index
      %c0_6 = arith.constant 0 : index
      %16 = vector.load %arg2[%c0, %c0_6] : memref<8x32xf32, #tpu.memory_space<vmem>>, vector<8x32xf32>
      %17 = arith.truncf %16 : vector<8x32xf32> to vector<8x32xbf16>
      %c0_7 = arith.constant 0 : index
      %c0_8 = arith.constant 0 : index
      %18 = vector.load %arg3[%c0_7, %c0_8] : memref<32x128xbf16, #tpu.memory_space<vmem>>, vector<32x128xbf16>
      %cst = arith.constant dense<0.000000e+00> : vector<8x128xf32>
      %19 = tpu.matmul %17, %18, %cst {dimension_numbers = #tpu.dot_dimension_numbers<[1], [0], [0], [1], [0, 0, 1, 1], [], []>} : vector<8x32xbf16>, vector<32x128xbf16>, vector<8x128xf32> -> vector<8x128xf32>
      %20 = vector.shape_cast %19 : vector<8x128xf32> to vector<1x8x128xf32>
      %c0_9 = arith.constant 0 : index
      %c0_10 = arith.constant 0 : index
      %21 = vector.load %arg10[%c0_9, %c0_10] : memref<8x128xf32, #tpu.memory_space<vmem>>, vector<8x128xf32>
      %cst_11 = arith.constant dense<0.000000e+00> : vector<8x128xf32>
      %22 = vector.multi_reduction <add>, %20, %cst_11 [0] : vector<1x8x128xf32> to vector<8x128xf32>
      %23 = arith.addf %21, %22 : vector<8x128xf32>
      %c0_12 = arith.constant 0 : index
      %c0_13 = arith.constant 0 : index
      %24 = vector.load %arg10[%c0_12, %c0_13] : memref<8x128xf32, #tpu.memory_space<vmem>>, vector<8x128xf32>
      tpu.vector_store %arg10[%c0_12, %c0_13], %23 {strides = array<i32>} : memref<8x128xf32, #tpu.memory_space<vmem>>, vector<8x128xf32>,
      %c0_14 = arith.constant 0 : index
      %c0_15 = arith.constant 0 : index
      %25 = vector.load %arg12[%c0_14, %c0_15] : memref<8x128xf32, #tpu.memory_space<vmem>>, vector<8x128xf32>
      %26 = arith.mulf %20, %20 : vector<1x8x128xf32>
      %cst_16 = arith.constant dense<0.000000e+00> : vector<8x128xf32>
      %27 = vector.multi_reduction <add>, %26, %cst_16 [0] : vector<1x8x128xf32> to vector<8x128xf32>
      %28 = arith.addf %25, %27 : vector<8x128xf32>
      %c0_17 = arith.constant 0 : index
      %c0_18 = arith.constant 0 : index
      %29 = vector.load %arg12[%c0_17, %c0_18] : memref<8x128xf32, #tpu.memory_space<vmem>>, vector<8x128xf32>
      tpu.vector_store %arg12[%c0_17, %c0_18], %28 {strides = array<i32>} : memref<8x128xf32, #tpu.memory_space<vmem>>, vector<8x128xf32>,
      %30 = arith.index_cast %1 : i32 to index
      %c0_19 = arith.constant 0 : index
      %31 = vector.load %arg8[%30, %c0_19] : memref<8x128xf32, #tpu.memory_space<vmem>>, vector<8x128xf32>
      tpu.vector_store %arg8[%30, %c0_19], %19 {strides = array<i32>} : memref<8x128xf32, #tpu.memory_space<vmem>>, vector<8x128xf32>,
    } else {
    }
    %c1_i32 = arith.constant 1 : i32
    %10 = arith.cmpi eq, %arg0, %c1_i32 : i32
    %11 = arith.extui %10 : i1 to i32
    %c0_i32_4 = arith.constant 0 : i32
    %12 = arith.cmpi ne, %11, %c0_i32_4 : i32
    scf.if %12 {
      %c0_i32_6 = arith.constant 0 : i32
      %16 = arith.cmpi eq, %arg1, %c0_i32_6 : i32
      %17 = arith.extui %16 : i1 to i32
      %c0_i32_7 = arith.constant 0 : i32
      %18 = arith.cmpi ne, %17, %c0_i32_7 : i32
      scf.if %18 {
        %c0_26 = arith.constant 0 : index
        %c0_27 = arith.constant 0 : index
        %44 = vector.load %arg5[%c0_26, %c0_27] : memref<1x128xf32, #tpu.memory_space<vmem>>, vector<1x128xf32>
        %c0_28 = arith.constant 0 : index
        %c0_29 = arith.constant 0 : index
        %45 = vector.load %arg6[%c0_28, %c0_29] : memref<1x128xf32, #tpu.memory_space<vmem>>, vector<1x128xf32>
        %c0_30 = arith.constant 0 : index
        %c0_31 = arith.constant 0 : index
        %46 = vector.load %arg10[%c0_30, %c0_31] : memref<8x128xf32, #tpu.memory_space<vmem>>, vector<8x128xf32>
        %cst_32 = arith.constant dense<0.000000e+00> : vector<128xf32>
        %47 = vector.multi_reduction <add>, %46, %cst_32 [0] : vector<8x128xf32> to vector<128xf32>
        %48 = vector.shape_cast %47 : vector<128xf32> to vector<1x128xf32>
        %c0_33 = arith.constant 0 : index
        %c0_34 = arith.constant 0 : index
        %49 = vector.load %arg12[%c0_33, %c0_34] : memref<8x128xf32, #tpu.memory_space<vmem>>, vector<8x128xf32>
        %cst_35 = arith.constant dense<0.000000e+00> : vector<128xf32>
        %50 = vector.multi_reduction <add>, %49, %cst_35 [0] : vector<8x128xf32> to vector<128xf32>
        %51 = vector.shape_cast %50 : vector<128xf32> to vector<1x128xf32>
        %cst_36 = arith.constant 1.250000e-01 : f32
        %52 = vector.broadcast %cst_36 : f32 to vector<1x128xf32>
        %53 = arith.mulf %48, %52 : vector<1x128xf32>
        %cst_37 = arith.constant 1.250000e-01 : f32
        %54 = vector.broadcast %cst_37 : f32 to vector<1x128xf32>
        %55 = arith.mulf %51, %54 : vector<1x128xf32>
        %56 = arith.mulf %53, %53 : vector<1x128xf32>
        %57 = arith.subf %55, %56 : vector<1x128xf32>
        %cst_38 = arith.constant 0.000000e+00 : f32
        %58 = vector.broadcast %cst_38 : f32 to vector<1x128xf32>
        %59 = arith.maximumf %57, %58 : vector<1x128xf32>
        %cst_39 = arith.constant 9.99999996E-13 : f32
        %60 = vector.broadcast %cst_39 : f32 to vector<1x128xf32>
        %61 = arith.addf %59, %60 : vector<1x128xf32>
        %62 = math.rsqrt %61 : vector<1x128xf32>
        %63 = arith.mulf %62, %44 : vector<1x128xf32>
        %cst_40 = arith.constant 0.000000e+00 : f32
        %64 = vector.broadcast %cst_40 : f32 to vector<1x128xf32>
        %65 = arith.subf %64, %53 : vector<1x128xf32>
        %66 = arith.mulf %65, %63 : vector<1x128xf32>
        %67 = arith.addf %66, %45 : vector<1x128xf32>
        %c0_41 = arith.constant 0 : index
        %c0_42 = arith.constant 0 : index
        %68 = vector.load %arg14[%c0_41, %c0_42] : memref<1x128xf32, #tpu.memory_space<vmem>>, vector<1x128xf32>
        tpu.vector_store %arg14[%c0_41, %c0_42], %63 {strides = array<i32>} : memref<1x128xf32, #tpu.memory_space<vmem>>, vector<1x128xf32>,
        %c0_43 = arith.constant 0 : index
        %c0_44 = arith.constant 0 : index
        %69 = vector.load %arg16[%c0_43, %c0_44] : memref<1x128xf32, #tpu.memory_space<vmem>>, vector<1x128xf32>
        tpu.vector_store %arg16[%c0_43, %c0_44], %67 {strides = array<i32>} : memref<1x128xf32, #tpu.memory_space<vmem>>, vector<1x128xf32>,
      } else {
      }
      %19 = arith.index_cast %1 : i32 to index
      %c0 = arith.constant 0 : index
      %20 = vector.load %arg8[%19, %c0] : memref<8x128xf32, #tpu.memory_space<vmem>>, vector<8x128xf32>
      %c0_8 = arith.constant 0 : index
      %c0_9 = arith.constant 0 : index
      %21 = vector.load %arg14[%c0_8, %c0_9] : memref<1x128xf32, #tpu.memory_space<vmem>>, vector<1x128xf32>
      %22 = vector.broadcast %21 : vector<1x128xf32> to vector<8x128xf32>
      %23 = arith.mulf %20, %22 : vector<8x128xf32>
      %c0_10 = arith.constant 0 : index
      %c0_11 = arith.constant 0 : index
      %24 = vector.load %arg16[%c0_10, %c0_11] : memref<1x128xf32, #tpu.memory_space<vmem>>, vector<1x128xf32>
      %25 = vector.broadcast %24 : vector<1x128xf32> to vector<8x128xf32>
      %26 = arith.addf %23, %25 : vector<8x128xf32>
      %cst = arith.constant 0.000000e+00 : f32
      %27 = vector.broadcast %cst : f32 to vector<8x128xf32>
      %28 = arith.maximumf %26, %27 : vector<8x128xf32>
      %29 = arith.truncf %28 : vector<8x128xf32> to vector<8x128xbf16>
      %c0_12 = arith.constant 0 : index
      %c0_13 = arith.constant 0 : index
      %30 = vector.load %arg4[%c0_12, %c0_13] : memref<128x128xbf16, #tpu.memory_space<vmem>>, vector<128x128xbf16>
      %cst_14 = arith.constant dense<0.000000e+00> : vector<8x128xf32>
      %31 = tpu.matmul %29, %30, %cst_14 {dimension_numbers = #tpu.dot_dimension_numbers<[1], [0], [0], [1], [0, 0, 1, 1], [], []>} : vector<8x128xbf16>, vector<128x128xbf16>, vector<8x128xf32> -> vector<8x128xf32>
      %32 = vector.shape_cast %31 : vector<8x128xf32> to vector<1x8x128xf32>
      %c0_15 = arith.constant 0 : index
      %c0_16 = arith.constant 0 : index
      %33 = vector.load %arg11[%c0_15, %c0_16] : memref<8x128xf32, #tpu.memory_space<vmem>>, vector<8x128xf32>
      %cst_17 = arith.constant dense<0.000000e+00> : vector<8x128xf32>
      %34 = vector.multi_reduction <add>, %32, %cst_17 [0] : vector<1x8x128xf32> to vector<8x128xf32>
      %35 = arith.addf %33, %34 : vector<8x128xf32>
      %c0_18 = arith.constant 0 : index
      %c0_19 = arith.constant 0 : index
      %36 = vector.load %arg11[%c0_18, %c0_19] : memref<8x128xf32, #tpu.memory_space<vmem>>, vector<8x128xf32>
      tpu.vector_store %arg11[%c0_18, %c0_19], %35 {strides = array<i32>} : memref<8x128xf32, #tpu.memory_space<vmem>>, vector<8x128xf32>,
      %c0_20 = arith.constant 0 : index
      %c0_21 = arith.constant 0 : index
      %37 = vector.load %arg13[%c0_20, %c0_21] : memref<8x128xf32, #tpu.memory_space<vmem>>, vector<8x128xf32>
      %38 = arith.mulf %32, %32 : vector<1x8x128xf32>
      %cst_22 = arith.constant dense<0.000000e+00> : vector<8x128xf32>
      %39 = vector.multi_reduction <add>, %38, %cst_22 [0] : vector<1x8x128xf32> to vector<8x128xf32>
      %40 = arith.addf %37, %39 : vector<8x128xf32>
      %c0_23 = arith.constant 0 : index
      %c0_24 = arith.constant 0 : index
      %41 = vector.load %arg13[%c0_23, %c0_24] : memref<8x128xf32, #tpu.memory_space<vmem>>, vector<8x128xf32>
      tpu.vector_store %arg13[%c0_23, %c0_24], %40 {strides = array<i32>} : memref<8x128xf32, #tpu.memory_space<vmem>>, vector<8x128xf32>,
      %42 = arith.index_cast %1 : i32 to index
      %c0_25 = arith.constant 0 : index
      %43 = vector.load %arg9[%42, %c0_25] : memref<8x128xf32, #tpu.memory_space<vmem>>, vector<8x128xf32>
      tpu.vector_store %arg9[%42, %c0_25], %31 {strides = array<i32>} : memref<8x128xf32, #tpu.memory_space<vmem>>, vector<8x128xf32>,
    } else {
    }
    %c2_i32 = arith.constant 2 : i32
    %13 = arith.cmpi eq, %arg0, %c2_i32 : i32
    %14 = arith.extui %13 : i1 to i32
    %c0_i32_5 = arith.constant 0 : i32
    %15 = arith.cmpi ne, %14, %c0_i32_5 : i32
    scf.if %15 {
      %c0_i32_6 = arith.constant 0 : i32
      %16 = arith.cmpi eq, %arg1, %c0_i32_6 : i32
      %17 = arith.extui %16 : i1 to i32
      %c0_i32_7 = arith.constant 0 : i32
      %18 = arith.cmpi ne, %17, %c0_i32_7 : i32
      scf.if %18 {
        %c0_14 = arith.constant 0 : index
        %c0_15 = arith.constant 0 : index
        %28 = vector.load %arg11[%c0_14, %c0_15] : memref<8x128xf32, #tpu.memory_space<vmem>>, vector<8x128xf32>
        %cst = arith.constant dense<0.000000e+00> : vector<128xf32>
        %29 = vector.multi_reduction <add>, %28, %cst [0] : vector<8x128xf32> to vector<128xf32>
        %30 = vector.shape_cast %29 : vector<128xf32> to vector<1x128xf32>
        %c0_16 = arith.constant 0 : index
        %c0_17 = arith.constant 0 : index
        %31 = vector.load %arg13[%c0_16, %c0_17] : memref<8x128xf32, #tpu.memory_space<vmem>>, vector<8x128xf32>
        %cst_18 = arith.constant dense<0.000000e+00> : vector<128xf32>
        %32 = vector.multi_reduction <add>, %31, %cst_18 [0] : vector<8x128xf32> to vector<128xf32>
        %33 = vector.shape_cast %32 : vector<128xf32> to vector<1x128xf32>
        %cst_19 = arith.constant 1.250000e-01 : f32
        %34 = vector.broadcast %cst_19 : f32 to vector<1x128xf32>
        %35 = arith.mulf %30, %34 : vector<1x128xf32>
        %cst_20 = arith.constant 1.250000e-01 : f32
        %36 = vector.broadcast %cst_20 : f32 to vector<1x128xf32>
        %37 = arith.mulf %33, %36 : vector<1x128xf32>
        %38 = arith.mulf %35, %35 : vector<1x128xf32>
        %39 = arith.subf %37, %38 : vector<1x128xf32>
        %cst_21 = arith.constant 0.000000e+00 : f32
        %40 = vector.broadcast %cst_21 : f32 to vector<1x128xf32>
        %41 = arith.maximumf %39, %40 : vector<1x128xf32>
        %cst_22 = arith.constant 9.99999996E-13 : f32
        %42 = vector.broadcast %cst_22 : f32 to vector<1x128xf32>
        %43 = arith.addf %41, %42 : vector<1x128xf32>
        %44 = math.rsqrt %43 : vector<1x128xf32>
        %cst_23 = arith.constant 0.000000e+00 : f32
        %45 = vector.broadcast %cst_23 : f32 to vector<1x128xf32>
        %46 = arith.subf %45, %35 : vector<1x128xf32>
        %47 = arith.mulf %46, %44 : vector<1x128xf32>
        %c0_24 = arith.constant 0 : index
        %c0_25 = arith.constant 0 : index
        %48 = vector.load %arg15[%c0_24, %c0_25] : memref<1x128xf32, #tpu.memory_space<vmem>>, vector<1x128xf32>
        tpu.vector_store %arg15[%c0_24, %c0_25], %44 {strides = array<i32>} : memref<1x128xf32, #tpu.memory_space<vmem>>, vector<1x128xf32>,
        %c0_26 = arith.constant 0 : index
        %c0_27 = arith.constant 0 : index
        %49 = vector.load %arg17[%c0_26, %c0_27] : memref<1x128xf32, #tpu.memory_space<vmem>>, vector<1x128xf32>
        tpu.vector_store %arg17[%c0_26, %c0_27], %47 {strides = array<i32>} : memref<1x128xf32, #tpu.memory_space<vmem>>, vector<1x128xf32>,
      } else {
      }
      %19 = arith.index_cast %1 : i32 to index
      %c0 = arith.constant 0 : index
      %20 = vector.load %arg9[%19, %c0] : memref<8x128xf32, #tpu.memory_space<vmem>>, vector<8x128xf32>
      %c0_8 = arith.constant 0 : index
      %c0_9 = arith.constant 0 : index
      %21 = vector.load %arg15[%c0_8, %c0_9] : memref<1x128xf32, #tpu.memory_space<vmem>>, vector<1x128xf32>
      %22 = vector.broadcast %21 : vector<1x128xf32> to vector<8x128xf32>
      %23 = arith.mulf %20, %22 : vector<8x128xf32>
      %c0_10 = arith.constant 0 : index
      %c0_11 = arith.constant 0 : index
      %24 = vector.load %arg17[%c0_10, %c0_11] : memref<1x128xf32, #tpu.memory_space<vmem>>, vector<1x128xf32>
      %25 = vector.broadcast %24 : vector<1x128xf32> to vector<8x128xf32>
      %26 = arith.addf %23, %25 : vector<8x128xf32>
      %c0_12 = arith.constant 0 : index
      %c0_13 = arith.constant 0 : index
      %27 = vector.load %arg7[%c0_12, %c0_13] : memref<8x128xf32, #tpu.memory_space<vmem>>, vector<8x128xf32>
      tpu.vector_store %arg7[%c0_12, %c0_13], %26 {strides = array<i32>} : memref<8x128xf32, #tpu.memory_space<vmem>>, vector<8x128xf32>,
    } else {
    }
    return
  }
  func.func @transform_0(%arg0: i32, %arg1: i32) -> (i32, i32) {
    %c0_i32 = arith.constant 0 : i32
    %0 = arith.cmpi eq, %arg0, %c0_i32 : i32
    %c0_i32_0 = arith.constant 0 : i32
    %1 = arith.select %0, %arg1, %c0_i32_0 : i32
    %c0_i32_1 = arith.constant 0 : i32
    %c0_i32_2 = arith.constant 0 : i32
    return %1, %c0_i32_1 : i32, i32
  }
  func.func @transform_1(%arg0: i32, %arg1: i32) -> (i32, i32) {
    %c0_i32 = arith.constant 0 : i32
    %c0_i32_0 = arith.constant 0 : i32
    %c0_i32_1 = arith.constant 0 : i32
    return %c0_i32, %c0_i32_0 : i32, i32
  }
  func.func @transform_2(%arg0: i32, %arg1: i32) -> (i32, i32) {
    %c0_i32 = arith.constant 0 : i32
    %c0_i32_0 = arith.constant 0 : i32
    %c0_i32_1 = arith.constant 0 : i32
    return %c0_i32, %c0_i32_0 : i32, i32
  }
  func.func @transform_3(%arg0: i32, %arg1: i32) -> (i32, i32) {
    %c0_i32 = arith.constant 0 : i32
    %c0_i32_0 = arith.constant 0 : i32
    %c0_i32_1 = arith.constant 0 : i32
    return %c0_i32, %c0_i32_0 : i32, i32
  }
  func.func @transform_4(%arg0: i32, %arg1: i32) -> (i32, i32) {
    %c0_i32 = arith.constant 0 : i32
    %c0_i32_0 = arith.constant 0 : i32
    %c0_i32_1 = arith.constant 0 : i32
    return %c0_i32, %c0_i32_0 : i32, i32
  }
  func.func @transform_5(%arg0: i32, %arg1: i32) -> (i32, i32) {
    %c2_i32 = arith.constant 2 : i32
    %0 = arith.cmpi eq, %arg0, %c2_i32 : i32
    %c0_i32 = arith.constant 0 : i32
    %1 = arith.select %0, %arg1, %c0_i32 : i32
    %c0_i32_0 = arith.constant 0 : i32
    %c0_i32_1 = arith.constant 0 : i32
    return %1, %c0_i32_0 : i32, i32
  }
}

</mosaic_0001>

<bundles_post_ra>
// kernel: tpu_custom_call.1
= control target key start
LH: loop header
LB: loop body
LE: loop exit
PB: predicated region body
PF: predicated region fallthrough
CT: control target
= control target key end

     0   :  { %10 = vsyncpa [#allocation13], 0  ;;  %s1242_s0 = inlined_call_operand.hbm [shape: f32[8,32], index: 0, kind: input, shape index: {}]   ;;  %s1243_s1 = inlined_call_operand.hbm [shape: bf16[32,128], index: 1, kind: input, shape index: {}]   ;;  %s1244_s2 = inlined_call_operand.hbm [shape: bf16[128,128], index: 2, kind: input, shape index: {}]   ;;  %s1245_s3 = inlined_call_operand.vmem [shape: f32[1,128], index: 3, kind: input, shape index: {}]   ;;  %s1246_s4 = inlined_call_operand.vmem [shape: f32[1,128], index: 4, kind: input, shape index: {}]   ;;  %s1247_s5 = inlined_call_operand.hbm [shape: f32[8,128], index: 5, kind: output, shape index: {}]  }
   0x1   :  { %12 = vsyncpa [#allocation13 + $0x1], 0 }
   0x2   :  { %13 = vsyncpa [#allocation16], 0 }
   0x3   :  { %14 = vsyncpa [#allocation14], 0 }
   0x4   :  { %16 = vsyncpa [#allocation14 + $0x1], 0  ;;  %s1078_s18 = smov 0   ;;  %s1080_s19 = smov 0  }
   0x5   :  { %s1082_s20 = smov 0  }
   0x6 LB: > { %s726_s21 = sadd.s32 4294967295, %s1035_s20   ;;  %s727_s22 = sadd.s32 4294967294, %s1035_s20   ;;  %s1035_s20 = sphi %s1082_s20, %s22_s20   ;;  %s1031_s19 = sphi %s1080_s19, %s1261_s19   ;;  %s1027_s18 = sphi %s1078_s18, %s1260_s18  }
   0x7   : > { %s34_s23 = sadd.s32 1, %s1031_s19  ;;  %p728_p0 = scmp.ge.s32.totalorder %s1035_s20, 1 }
   0x8   : > { %p36_p1 = scmp.ge.s32.totalorder %s34_s23, 3  ;;  %p183_p2 = scmp.lt.s32.totalorder %s1035_s20, 4 }
   0x9   : > { %p1100_p3 = scmp.eq.s32.totalorder %s726_s21, 0  ;;  %s1037_s26 = smov [#allocation15]  }
   0xa   : > { %s1263_s23 = smov (%p36_p1, %s34_s23), 0  ;;  %p1106_p4 = pnand %p728_p0, %p183_p2 }
   0xb   : > { %s1251_s24 = scalar_select %p1100_p3, 1, 0 }
   0xc   : > { %s1252_s25 = scalar_select %p1106_p4, 1, 0 }
   0xd   : > { %s195_s27 = sshll.u32 %s1037_s26, 4  ;;  %p817_p5 = pneg %p1106_p4  ;;  %s196_s27 = int_to_ptr.vmem [resolvable:$true] %s195_s27 }
   0xe   : > { %s1038_s29 = smov [#allocation17]   ;;  %s891_s8 = scalar_lea.hbm %s1243_s1, 256 }
   0xf   : > { %p1114_p6 = pnand %p1100_p3, %p817_p5  ;;  %s208_s30 = sshll.u32 %s1038_s29, 4  ;;  %s209_s30 = int_to_ptr.vmem [resolvable:$true] %s208_s30 }
  0x10   : > { %p892_p8 = scmp.ne.s32.totalorder %s1243_s1, %s891_s8  ;;  %p898_p12 = scmp.lt.u32.totalorder %s891_s8, %s1243_s1 }
  0x11   : > { %p893_p9 = pneg %p1114_p6 }
  0x13   : > { %p894_p10 = pnand %p893_p9, %p892_p8 }
  0x15   : > { %p895_p11 = pneg %p894_p10 }
  0x17   : > { %p900_p13 = pnand %p898_p12, %p895_p11 }
  0x19   : > { %903 = shalt.err (!%p900_p13)
}
  0x1a   : > { %s904_s13 = scalar_lea.vmem %s196_s27, 256  ;;  %p912_p5 = scmp.lt.s32.totalorder %s196_s27, %s196_s27 }
  0x1b   : > { %p905_p0 = scmp.ne.s32.totalorder %s196_s27, %s904_s13  ;;  %p913_p7 = scmp.lt.s32.totalorder %s904_s13, %s904_s13 }
  0x1d   : > { %p907_p1 = pnand %p905_p0, %p893_p9  ;;  %p914_p3 = por %p913_p7, %p912_p5 }
  0x1f   : > { %p908_p2 = pneg %p907_p1 }
  0x21   : > { %p915_p4 = pnand %p914_p3, %p908_p2 }
  0x23   : > { %918 = shalt.err (!%p915_p4)
}
  0x24   : > { %s1039_s14 = smov 64   ;;  %s1040_s15 = smov 4  }
  0x25   : > { %820 = dma.hbm_to_vmem [thread:$0]  (!%p1114_p6), %s1243_s1, 256, %s196_s27, [#allocation16], %s1039_s14, %s1039_s14, %s1040_s15  }
  0x26   : > { %s919_s6 = scalar_lea.hbm %s1244_s2, 1024 }
  0x27   : > { %p920_p3 = scmp.ne.s32.totalorder %s1244_s2, %s919_s6  ;;  %p926_p10 = scmp.lt.u32.totalorder %s919_s6, %s1244_s2 }
  0x29   : > { %p922_p4 = pnand %p920_p3, %p893_p9 }
  0x2b   : > { %p923_p7 = pneg %p922_p4 }
  0x2d   : > { %p928_p11 = pnand %p926_p10, %p923_p7 }
  0x2f   : > { %931 = shalt.err (!%p928_p11)
}
  0x30   : > { %s932_s27 = scalar_lea.vmem %s209_s30, 1024  ;;  %p940_p1 = scmp.lt.s32.totalorder %s209_s30, %s209_s30 }
  0x31   : > { %p933_p12 = scmp.ne.s32.totalorder %s209_s30, %s932_s27  ;;  %p941_p2 = scmp.lt.s32.totalorder %s932_s27, %s932_s27 }
  0x33   : > { %p935_p13 = pnand %p933_p12, %p893_p9  ;;  %p942_p5 = por %p941_p2, %p940_p1 }
  0x35   : > { %p936_p0 = pneg %p935_p13 }
  0x37   : > { %p943_p8 = pnand %p942_p5, %p936_p0 }
  0x39   : > { %946 = shalt.err (!%p943_p8)
}
  0x3a   : > { %823 = dma.hbm_to_vmem [thread:$0]  (!%p1114_p6), %s1244_s2, 1024, %s209_s30, [#allocation16], %s1039_s14, %s1039_s14, %s1040_s15  }
  0x3b   : > { %p1254_p3 = scmp.lt.s32.totalorder %s1035_s20, 3  ;;  %p1255_p4 = scmp.eq.s32.totalorder %s1035_s20, 0 }
  0x3c   : > { %s1041_s16 = smov [#allocation12]   ;;  %s947_s28 = scalar_lea.hbm %s1242_s0, 128 }
  0x3d   : > { %p1166_p7 = pnand %p1255_p4, %p1254_p3  ;;  %s241_s17 = sshll.u32 %s1041_s16, 4  ;;  %s242_s17 = int_to_ptr.vmem [resolvable:$true] %s241_s17 }
  0x3e   : > { %p948_p9 = scmp.ne.s32.totalorder %s1242_s0, %s947_s28  ;;  %p954_p11 = scmp.lt.u32.totalorder %s947_s28, %s1242_s0 }
  0x3f   : > { %p949_p6 = pneg %p1166_p7 }
  0x41   : > { %p950_p8 = pnand %p949_p6, %p948_p9 }
  0x43   : > { %p951_p10 = pneg %p950_p8 }
  0x45   : > { %p956_p12 = pnand %p954_p11, %p951_p10 }
  0x47   : > { %959 = shalt.err (!%p956_p12)
}
  0x48   : > { %s960_s15 = scalar_lea.vmem %s242_s17, 128  ;;  %s967_s8 = scalar_lea.vmem %s242_s17, 256 }
  0x49   : > { %p961_p13 = scmp.ne.s32.totalorder %s242_s17, %s960_s15  ;;  %p968_p2 = scmp.lt.s32.totalorder %s242_s17, %s242_s17 }
  0x4a   : > { %p969_p5 = scmp.lt.s32.totalorder %s967_s8, %s960_s15 }
  0x4b   : > { %p963_p0 = pnand %p961_p13, %p949_p6 }
  0x4c   : > { %p970_p3 = por %p969_p5, %p968_p2 }
  0x4d   : > { %p964_p1 = pneg %p963_p0 }
  0x4f   : > { %p971_p4 = pnand %p970_p3, %p964_p1 }
  0x51   : > { %974 = shalt.err (!%p971_p4)
}
  0x52   : > { %827 = dma.hbm_to_vmem [thread:$0]  (!%p1166_p7), %s1242_s0, 128, %s242_s17, [#allocation13]  }
  0x53   : > { %p1257_p9 = scmp.ne.s32.totalorder %s1252_s25, 0 }
  0x54   : > { %p1258_p8 = scmp.ne.s32.totalorder (!%p1257_p9), %s1251_s24, 0 }
  0x55   : > { %250 = sbr.rel (%p1257_p9) target bundleno = 680 (0x2a8), region = 40 }
  0x5c   : > { %1014 = dma.done.wait (%p1258_p8), [#allocation13], 128  }
  0x5d   : > { %1016 = vsyncadd (%p1258_p8), [#allocation13], 4294967168 }
  0x5e   : > { %1018 = dma.done.wait (%p1258_p8), [#allocation16], 1280  }
  0x5f   : > { %1020 = vsyncadd (%p1258_p8), [#allocation16], 4294966016  ;;  %p297_p6 = scmp.eq.s32.totalorder %s1027_s18, 0 }
  0x60   : > { %v1042_v0 = vmov (%p297_p6), 0.0  }
  0x61   : > { %302 = sbr.rel (!%p297_p6) target bundleno = 104 (0x68), region = 56  ;;  %303 = vst [vmem:[#allocation4] sm:$0xff] (%p297_p6), %v1042_v0  ;;  %304 = vst [vmem:[#allocation6] sm:$0xff] (%p297_p6), %v1042_v0 }
  0x62   : > { %305 = vst [vmem:[#allocation5] sm:$0xff] (%p297_p6), %v1042_v0  ;;  %306 = vst [vmem:[#allocation7] sm:$0xff] (%p297_p6), %v1042_v0 }
  0x68 PF: > { %p738_p7 = scmp.ne.s32.totalorder %s1027_s18, 0 }
  0x69   : > { %v877_v1 = vld [vmem:[#allocation15] sm:$0xff] (!%p738_p7)   ;;  %v1043_v2 = vmov (!%p738_p7), 0.0   ;;  %v878_v3 = vld [vmem:[#allocation15 + $0x8] sm:$0xff] (!%p738_p7)   ;;  %vm1044_vm0 = vmmov (!%p738_p7), 0   ;;  %v310_v4 = vld [vmem:[#allocation12] sm:$0xff] (!%p738_p7)  ;;  %vm328_vm1 = vcmask (!%p738_p7), 261120  }
  0x6a   : > { %309 = sbr.rel (%p738_p7) target bundleno = 331 (0x14b), region = 60  ;;  %773 = vmatprep.subr.bf16.mxu0 (!%p738_p7), %v1043_v2  ;;  %777 = vmatprep.mubr.msk.bf16.mxu0 (!%p738_p7), %vm1044_vm0, %v1043_v2  ;;  %v311_v5 = vpack.c.bf16 (!%p738_p7), %v310_v4, %v310_v4  ;;  %v372_v6 = vld [vmem:[#allocation4] sm:$0xff] (!%p738_p7)  ;;  %v376_v8 = vld [vmem:[#allocation6] sm:$0xff] (!%p738_p7) }
  0x6b   : > { %774 = vmatpush3.bf16.msra.mxu0 (!%p738_p7), %v877_v1 }
  0x6c   : > { %775 = vmatprep.subr.bf16.mxu0 (!%p738_p7), %v1043_v2 }
  0x6f   : > { %776 = vmatpush3.bf16.msra.mxu0 (!%p738_p7), %v878_v3 }
  0x72   : > { %778 = vmatmul.mubr.msk.bf16.vlgmr.msra.gmra.mrb[0].mxu0 %vm328_vm1, %v311_v5 }
 0x145   : > { %v366_v7 = vpop.f32.mrb[0].mxu0 }
 0x146   : > { %v374_v9 = vadd.f32 %v372_v6, %v366_v7  ;;  %v377_v10 = vmul.f32 %v366_v7, %v366_v7  ;;  %382 = vst [vmem:[#allocation2] sm:$0xff] %v366_v7  ;;  %v779_v11 = vpop.f32.mrb[1].mxu0 }
 0x147   : > { %v369_v12 = vpop.f32.mrb[2].mxu0 }
 0x148   : > { %375 = vst [vmem:[#allocation4] sm:$0xff] %v374_v9  ;;  %v379_v13 = vadd.f32 %v377_v10, %v376_v8  ;;  %v780_v14 = vpop.f32.mrb[3].mxu0 }
 0x14a   : > { %380 = vst [vmem:[#allocation6] sm:$0xff] %v379_v13 }
 0x14b PF: > { %p742_p10 = scmp.ne.s32.totalorder %s1027_s18, 1 }
 0x14c   : > { %v879_v15 = vld [vmem:[#allocation17] sm:$0xff] (!%p742_p10)   ;;  %v1045_v16 = vmov (!%p742_p10), 0.0   ;;  %v880_v17 = vld [vmem:[#allocation17 + $0x8] sm:$0xff] (!%p742_p10)   ;;  %vm1046_vm2 = vmmov (!%p742_p10), 0   ;;  %v881_v18 = vld [vmem:[#allocation17 + $0x10] sm:$0xff] (!%p742_p10)  }
 0x14d   : > { %386 = sbr.rel (%p742_p10) target bundleno = 606 (0x25e), region = 64  ;;  %781 = vmatprep.subr.bf16.mxu0 (!%p742_p10), %v1045_v16  ;;  %797 = vmatprep.mubr.msk.bf16.mxu0 (!%p742_p10), %vm1046_vm2, %v1045_v16  ;;  %v882_v22 = vld [vmem:[#allocation17 + $0x18] sm:$0xff] (!%p742_p10)   ;;  %v883_v27 = vld [vmem:[#allocation17 + $0x20] sm:$0xff] (!%p742_p10)   ;;  %v884_v32 = vld [vmem:[#allocation17 + $0x28] sm:$0xff] (!%p742_p10)  }
 0x14e   : > { %782 = vmatpush3.bf16.msra.mxu0 (!%p742_p10), %v879_v15  ;;  %v885_v37 = vld [vmem:[#allocation17 + $0x30] sm:$0xff] (!%p742_p10)   ;;  %v886_v41 = vld [vmem:[#allocation17 + $0x38] sm:$0xff] (!%p742_p10)   ;;  %v390_v44 = vld [vmem:[%s1245_s3] sm:$0x1] (!%p742_p10) }
 0x14f   : > { %783 = vmatprep.subr.bf16.mxu0 (!%p742_p10), %v1045_v16  ;;  %v392_v19 = vld [vmem:[#allocation4] sm:$0xff] (!%p742_p10)  ;;  %v391_v48 = vld [vmem:[%s1246_s4] sm:$0x1] (!%p742_p10)  ;;  %v543_v58 = vld [vmem:[#allocation5] sm:$0xff] (!%p742_p10) }
 0x150   : > { %v393_v20 = vrot.slane (!%p742_p10), %v392_v19, 4  ;;  %v420_v51 = vld [vmem:[#allocation2] sm:$0xff] (!%p742_p10)  ;;  %v547_v60 = vld [vmem:[#allocation7] sm:$0xff] (!%p742_p10) }
 0x151   : > { %v399_v21 = vld [vmem:[#allocation6] sm:$0xff] (!%p742_p10) }
 0x152   : > { %784 = vmatpush3.bf16.msra.mxu0 (!%p742_p10), %v880_v17  ;;  %v400_v23 = vrot.slane (!%p742_p10), %v399_v21, 4  ;;  %v394_v24 = vadd.f32 (!%p742_p10), %v393_v20, %v392_v19 }
 0x153   : > { %785 = vmatprep.subr.bf16.mxu0 (!%p742_p10), %v1045_v16 }
 0x154   : > { %v401_v25 = vadd.f32 %v400_v23, %v399_v21  ;;  %v395_v26 = vrot.slane %v394_v24, 2 }
 0x156   : > { %786 = vmatpush3.bf16.msra.mxu0 %v881_v18  ;;  %v402_v28 = vrot.slane %v401_v25, 2  ;;  %v396_v29 = vadd.f32 %v395_v26, %v394_v24 }
 0x157   : > { %787 = vmatprep.subr.bf16.mxu0 %v1045_v16 }
 0x158   : > { %v403_v30 = vadd.f32 %v402_v28, %v401_v25  ;;  %v397_v31 = vrot.slane %v396_v29, 1 }
 0x15a   : > { %788 = vmatpush3.bf16.msra.mxu0 %v882_v22  ;;  %v404_v33 = vrot.slane %v403_v30, 1  ;;  %v398_v34 = vadd.f32 %v397_v31, %v396_v29 }
 0x15b   : > { %789 = vmatprep.subr.bf16.mxu0 %v1045_v16 }
 0x15c   : > { %v405_v35 = vadd.f32 %v404_v33, %v403_v30  ;;  %v406_v36 = vmul.f32 0.125, %v398_v34 }
 0x15e   : > { %790 = vmatpush3.bf16.msra.mxu0 %v883_v27  ;;  %v407_v38 = vmul.f32 0.125, %v405_v35  ;;  %v408_v39 = vmul.f32 %v406_v36, %v406_v36  ;;  %v414_v45 = vsub.f32 0.0, %v406_v36 }
 0x15f   : > { %791 = vmatprep.subr.bf16.mxu0 %v1045_v16 }
 0x160   : > { %v409_v40 = vsub.f32 %v407_v38, %v408_v39 }
 0x162   : > { %792 = vmatpush3.bf16.msra.mxu0 %v884_v32  ;;  %v410_v42 = vmax.f32 %v409_v40, 0.0 }
 0x163   : > { %793 = vmatprep.subr.bf16.mxu0 %v1045_v16 }
 0x164   : > { %v411_v43 = vadd.f32 1e-12, %v410_v42 }
 0x166   : > { %794 = vmatpush3.bf16.msra.mxu0 %v885_v37  ;;  %887 = vrsqrt.f32 %v411_v43 }
 0x167   : > { %795 = vmatprep.subr.bf16.mxu0 %v1045_v16 }
 0x16a   : > { %796 = vmatpush3.bf16.msra.mxu0 %v886_v41 }
 0x170   : > { %v888_v46 = vpop.eup %887 }
 0x171   : > { %v413_v47 = vmul.f32 %v888_v46, %v390_v44 }
 0x173   : > { %v415_v49 = vmul.f32 %v414_v45, %v413_v47  ;;  %417 = vst [vmem:[#allocation8] sm:$0x1] %v413_v47 }
 0x175   : > { %v416_v50 = vadd.f32 %v415_v49, %v391_v48 }
 0x177   : > { %418 = vst [vmem:[#allocation10] sm:$0x1] %v416_v50 }
 0x17a   : > { %v743_v52 = vld [vmem:[#allocation8] ss:$0 sm:$0xff] }
 0x17b   : > { %v428_v53 = vmul.f32 %v743_v52, %v420_v51 }
 0x17e   : > { %v744_v54 = vld [vmem:[#allocation10] ss:$0 sm:$0xff] }
 0x17f   : > { %v436_v55 = vadd.f32 %v744_v54, %v428_v53 }
 0x181   : > { %v437_v56 = vmax.f32 %v436_v55, 0.0 }
 0x183   : > { %v438_v57 = vpack.c.bf16 %v437_v56, %v437_v56 }
 0x185   : > { %798 = vmatmul.mubr.bf16.vlgmr.msra.gmra.mrb[0].mxu0 %v438_v57 }
 0x258   : > { %v537_v59 = vpop.f32.mrb[0].mxu0 }
 0x259   : > { %v545_v61 = vadd.f32 %v543_v58, %v537_v59  ;;  %v548_v62 = vmul.f32 %v537_v59, %v537_v59  ;;  %553 = vst [vmem:[#allocation3] sm:$0xff] %v537_v59  ;;  %v799_v63 = vpop.f32.mrb[1].mxu0 }
 0x25a   : > { %v540_v0 = vpop.f32.mrb[2].mxu0 }
 0x25b   : > { %546 = vst [vmem:[#allocation5] sm:$0xff] %v545_v61  ;;  %v550_v1 = vadd.f32 %v548_v62, %v547_v60  ;;  %v800_v2 = vpop.f32.mrb[3].mxu0 }
 0x25d   : > { %551 = vst [vmem:[#allocation7] sm:$0xff] %v550_v1 }
 0x25e PF: > { %p753_p11 = scmp.ne.s32.totalorder %s1027_s18, 2 }
 0x260   : > { %557 = sbr.rel (%p753_p11) target bundleno = 657 (0x291), region = 72  ;;  %v587_v26 = vld [vmem:[#allocation3] sm:$0xff] (!%p753_p11) }
 0x262   : > { %v561_v3 = vld [vmem:[#allocation5] sm:$0xff] (!%p753_p11) }
 0x263   : > { %v562_v5 = vrot.slane (!%p753_p11), %v561_v3, 4 }
 0x264   : > { %v568_v4 = vld [vmem:[#allocation7] sm:$0xff] (!%p753_p11) }
 0x265   : > { %v569_v6 = vrot.slane (!%p753_p11), %v568_v4, 4  ;;  %v563_v7 = vadd.f32 (!%p753_p11), %v562_v5, %v561_v3 }
 0x267   : > { %v570_v8 = vadd.f32 %v569_v6, %v568_v4  ;;  %v564_v9 = vrot.slane %v563_v7, 2 }
 0x269   : > { %v571_v10 = vrot.slane %v570_v8, 2  ;;  %v565_v11 = vadd.f32 %v564_v9, %v563_v7 }
 0x26b   : > { %v572_v12 = vadd.f32 %v571_v10, %v570_v8  ;;  %v566_v13 = vrot.slane %v565_v11, 1 }
 0x26d   : > { %v573_v14 = vrot.slane %v572_v12, 1  ;;  %v567_v15 = vadd.f32 %v566_v13, %v565_v11 }
 0x26f   : > { %v574_v16 = vadd.f32 %v573_v14, %v572_v12  ;;  %v575_v17 = vmul.f32 0.125, %v567_v15 }
 0x271   : > { %v576_v18 = vmul.f32 0.125, %v574_v16  ;;  %v577_v19 = vmul.f32 %v575_v17, %v575_v17  ;;  %v582_v23 = vsub.f32 0.0, %v575_v17 }
 0x273   : > { %v578_v20 = vsub.f32 %v576_v18, %v577_v19 }
 0x275   : > { %v579_v21 = vmax.f32 %v578_v20, 0.0 }
 0x277   : > { %v580_v22 = vadd.f32 1e-12, %v579_v21 }
 0x279   : > { %889 = vrsqrt.f32 %v580_v22 }
 0x283   : > { %v890_v24 = vpop.eup %889 }
 0x284   : > { %584 = vst [vmem:[#allocation9] sm:$0x1] %v890_v24  ;;  %v583_v25 = vmul.f32 %v890_v24, %v582_v23 }
 0x286   : > { %585 = vst [vmem:[#allocation11] sm:$0x1] %v583_v25 }
 0x28b   : > { %v754_v27 = vld [vmem:[#allocation9] ss:$0 sm:$0xff] }
 0x28c   : > { %v595_v28 = vmul.f32 %v754_v27, %v587_v26 }
 0x28d   : > { %v755_v29 = vld [vmem:[#allocation11] ss:$0 sm:$0xff] }
 0x28e   : > { %v603_v30 = vadd.f32 %v755_v29, %v595_v28 }
 0x290   : > { %604 = vst [vmem:[#allocation18] sm:$0xff] %v603_v30 }
 0x291 PF: > { %p1208_p12 = scmp.eq.s32.totalorder %s726_s21, 2  ;;  %s1047_s12 = smov [#allocation18]  }
 0x292   : > { %s621_s13 = sshll.u32 %s1047_s12, 4  ;;  %s622_s13 = int_to_ptr.vmem [resolvable:$true] %s621_s13 }
 0x293   : > { %s975_s16 = scalar_lea.vmem %s622_s13, 128  ;;  %s981_s17 = scalar_lea.vmem %s622_s13, 256 }
 0x294   : > { %p976_p13 = scmp.ne.s32.totalorder %s622_s13, %s975_s16  ;;  %p982_p2 = scmp.lt.s32.totalorder %s622_s13, %s622_s13 }
 0x295   : > { %p983_p5 = scmp.lt.s32.totalorder %s981_s17, %s975_s16 }
 0x296   : > { %p977_p0 = pnand %p976_p13, %p1208_p12 }
 0x297   : > { %p984_p3 = por %p983_p5, %p982_p2 }
 0x298   : > { %p978_p1 = pneg %p977_p0 }
 0x29a   : > { %p985_p4 = pnand %p984_p3, %p978_p1 }
 0x29c   : > { %988 = shalt.err (!%p985_p4)
}
 0x29d   : > { %s989_s29 = scalar_lea.hbm %s1247_s5, 128 }
 0x29e   : > { %p990_p9 = scmp.ne.s32.totalorder %s1247_s5, %s989_s29  ;;  %p995_p7 = scmp.lt.u32.totalorder %s989_s29, %s1247_s5 }
 0x2a0   : > { %p991_p8 = pnand %p990_p9, %p1208_p12 }
 0x2a2   : > { %p992_p6 = pneg %p991_p8 }
 0x2a4   : > { %p997_p10 = pnand %p995_p7, %p992_p6 }
 0x2a6   : > { %1000 = shalt.err (!%p997_p10)
}
 0x2a7   : > { %814 = dma.vmem_to_hbm [thread:$0]  (%p1208_p12), %s622_s13, 128, %s1247_s5, [#allocation14]  }
 0x2a8 PF: > { %p840_p11 = scmp.ge.s32.totalorder %s1035_s20, 2  ;;  %p841_p13 = scmp.eq.s32.totalorder %s727_s22, 2 }
 0x2aa   : > { %p829_p0 = pnand %p841_p13, %p840_p11 }
 0x2ac   : > { %1022 = dma.done.wait (!%p829_p0), [#allocation14], 128  }
 0x2ad   : > { %1024 = vsyncadd (!%p829_p0), [#allocation14], 4294967168  ;;  %s22_s20 = sadd.s32 1, %s1035_s20   ;;  %s1260_s18 = smov %s1031_s19 }
 0x2ae   : > { %p19_p1 = scmp.ge.s32.totalorder %s22_s20, 5   ;;  %s1261_s19 = smov %s1263_s23 }
 0x2b0   :  { %21 = sbr.rel (!%p19_p1) target bundleno = 6 (0x6), region = 121 }
 0x2b7   :  { %639 = vsyncpa [#allocation13], 1 }
 0x2b8   :  { %641 = vsyncpa [#allocation13 + $0x1], 1 }
 0x2b9   :  { %642 = vsyncpa [#allocation16], 1 }
 0x2ba   :  { %643 = vsyncpa [#allocation14], 1 }
 0x2bb   :  { %645 = vsyncpa [#allocation14 + $0x1], 1 }

</bundles_post_ra>
